<compile_context>
chip_gen: v5e
topology: v5e:2x2
jax: 0.10.0
libtpu: 0.0.40
codegen_flags: <defaults>
</compile_context>

<pallas_src>
import functools

import jax
import jax.numpy as jnp
from jax.experimental import pallas as pl
from jax.experimental.pallas import tpu as pltpu


# ------------------------------ kernel ---------------------------------------


def _prediction_kernel(w_ref, b_ref, x_ref, o_ref):
    # w_ref: (1, C, 1) f32 VMEM   1x1-conv weight (out_channels == 1)
    # b_ref: (1,)      f32 SMEM   conv bias
    # x_ref: (Bt, C, T)    VMEM   input tile (batch x channels x flat HW lanes)
    # o_ref: (Bt, 1, T)    VMEM   sigmoid(w . x + b) tile
    x = x_ref[...].astype(jnp.float32)         # full-vreg, lane-dense loads
    w = w_ref[...]                             # broadcast weight, built once
    logits = jnp.sum(x * w, axis=1, keepdims=True) + b_ref[0]   # (Bt, 1, T)
    e = jnp.exp(-logits)                       # EUP transcendental
    o_ref[...] = pl.reciprocal(1.0 + e, approx=False).astype(o_ref.dtype)


# ------------------------------ tiling ---------------------------------------


def _vmem_capacity_bytes():
    try:
        cap = getattr(pltpu.get_tpu_info(), "vmem_capacity_bytes", None)
        if cap:
            return int(cap)
    except Exception:
        pass
    return 64 * 1024 * 1024   # conservative default: v7x per-TensorCore VMEM


def _choose_tiles(B, C, HW, itemsize, vmem_cap):
    """Pick (batch tile, lane tile) for streaming (Bt, C, T) blocks.

    Target a multi-MiB input block (DMA time >> ~0.35us per-step overhead)
    while keeping double-buffered blocks + compiler temporaries comfortably
    inside the generation's VMEM capacity.
    """
    budget = min(4 * 1024 * 1024, vmem_cap // 16)      # bytes per input block
    row_bytes = max(1, C * itemsize)
    t_cap = max(128, (budget // row_bytes) // 128 * 128)
    if HW <= t_cap:
        T = HW            # full extent (allowed even if not a multiple of 128)
    else:
        T = t_cap         # multiple of 128; ragged tail clipped by the pipeline
    blk_bytes = C * T * itemsize
    b_tile = max(1, min(B, budget // max(1, blk_bytes)))
    # Keep >= 2 grid steps when possible so v7x can shard across its 2 TCs.
    if b_tile >= B and HW <= T and B > 1:
        b_tile = -(-B // 2)
    return b_tile, T


# ------------------------------ wrapper ---------------------------------------


@jax.jit
def prediction_forward(feats, weight, bias):
    """Pallas equivalent of Prediction.forward: Conv2d(C, 1, 1) + Sigmoid.

    feats : (B, C, H, W)
    weight: (1, C, 1, 1)
    bias  : (1,)
    returns (B, 1, H, W) in feats.dtype
    """
    B, C, H, W = feats.shape
    HW = H * W
    itemsize = jnp.dtype(feats.dtype).itemsize

    x = feats.reshape(B, C, HW)                   # no-copy reshape, no padding
    w_arr = weight.reshape(1, C, 1).astype(jnp.float32)
    b_arr = bias.reshape(1).astype(jnp.float32)

    vmem_cap = _vmem_capacity_bytes()
    b_tile, T = _choose_tiles(B, C, HW, itemsize, vmem_cap)
    grid = (pl.cdiv(B, b_tile), pl.cdiv(HW, T))

    in_blk = b_tile * C * T * itemsize
    out_blk = b_tile * T * itemsize
    vmem_limit = int(min(vmem_cap * 3 // 4,
                         max(8 * (in_blk + out_blk), 32 * 1024 * 1024)))

    cost = pl.CostEstimate(
        flops=2 * B * C * HW,
        transcendentals=B * HW,
        bytes_accessed=itemsize * (B * C * HW + B * HW) + 4 * (C + 1),
    )

    out = pl.pallas_call(
        _prediction_kernel,
        out_shape=jax.ShapeDtypeStruct((B, 1, HW), feats.dtype),
        grid_spec=pltpu.PrefetchScalarGridSpec(
            num_scalar_prefetch=0,
            grid=grid,
            in_specs=[
                pl.BlockSpec((1, C, 1), lambda b, h: (0, 0, 0)),     # weight
                pl.BlockSpec(memory_space=pltpu.MemorySpace.SMEM),   # bias
                pl.BlockSpec((b_tile, C, T), lambda b, h: (b, 0, h)),
            ],
            out_specs=pl.BlockSpec((b_tile, 1, T), lambda b, h: (b, 0, h)),
        ),
        compiler_params=pltpu.CompilerParams(
            dimension_semantics=("parallel", "parallel"),
            vmem_limit_bytes=vmem_limit,
        ),
        cost_estimate=cost,
    )(w_arr, b_arr, x)

    return out.reshape(B, 1, H, W)


# ------------------------------- test ----------------------------------------


if __name__ == "__main__":
    key = jax.random.PRNGKey(0)
    k_x, k_w, k_b = jax.random.split(key, 3)

    B, C, H, W = 2, 4, 16, 16
    feats = jax.random.normal(k_x, (B, C, H, W), dtype=jnp.float32)

    # Deterministic synthetic "Conv2d(C, 1, 1)" parameters (no checkpoint).
    weight = jax.random.normal(k_w, (1, C, 1, 1), dtype=jnp.float32) * 0.1
    bias = jax.random.normal(k_b, (1,), dtype=jnp.float32) * 0.1

    def ref_fn(f, w, b):
        return jax.nn.sigmoid(
            jnp.einsum("bchw,oc->bohw", f, w.reshape(1, -1))
            + b.reshape(1, 1, 1, 1)
        )

    pred = jax.block_until_ready(prediction_forward(feats, weight, bias))
    assert pred.shape == (B, 1, H, W)
    assert jnp.allclose(pred, ref_fn(feats, weight, bias), atol=1e-5, rtol=1e-5)

    # Non-128-aligned spatial shape exercises the no-padding (full-extent lane
    # block) path.
    feats2 = jax.random.normal(k_x, (B, C, 7, 9), dtype=jnp.float32)
    pred2 = jax.block_until_ready(prediction_forward(feats2, weight, bias))
    assert pred2.shape == (B, 1, 7, 9)
    assert jnp.allclose(pred2, ref_fn(feats2, weight, bias), atol=1e-5, rtol=1e-5)

    print("KERNEL_OK")
</pallas_src>

<mosaic_0001>
module attributes {stable_mosaic.version = 11 : i64} {
  func.func @_prediction_kernel(%arg0: i32, %arg1: i32, %arg2: memref<1x4x1xf32, #tpu.memory_space<vmem>>, %arg3: memref<1xf32, #tpu.memory_space<smem>>, %arg4: memref<1x4x256xf32, #tpu.memory_space<vmem>>, %arg5: memref<1x1x256xf32, #tpu.memory_space<vmem>>) attributes {dimension_semantics = [#tpu.dimension_semantics<parallel>, #tpu.dimension_semantics<parallel>], iteration_bounds = array<i64: 2, 1>, scalar_prefetch = 0 : i64, scratch_operands = 0 : i64, tpu.core_type = #tpu.core_type<tc>, window_params = [{pipeline_mode = #tpu.pipeline_mode<synchronous>, transform_indices = @transform_0, window_bounds = array<i64: 1, 4, 1>}, {transform_indices = @transform_1, window_bounds = array<i64: 1>}, {transform_indices = @transform_2, window_bounds = array<i64: 1, 4, 256>}, {transform_indices = @transform_3, window_bounds = array<i64: 1, 1, 256>}]} {
    %c0 = arith.constant 0 : index
    %c0_0 = arith.constant 0 : index
    %c0_1 = arith.constant 0 : index
    %0 = vector.load %arg4[%c0, %c0_0, %c0_1] : memref<1x4x256xf32, #tpu.memory_space<vmem>>, vector<1x4x256xf32>
    %c0_2 = arith.constant 0 : index
    %c0_3 = arith.constant 0 : index
    %c0_4 = arith.constant 0 : index
    %1 = vector.load %arg2[%c0_2, %c0_3, %c0_4] : memref<1x4x1xf32, #tpu.memory_space<vmem>>, vector<1x4x1xf32>
    %2 = vector.broadcast %1 : vector<1x4x1xf32> to vector<1x4x256xf32>
    %3 = arith.mulf %0, %2 : vector<1x4x256xf32>
    %cst = arith.constant dense<0.000000e+00> : vector<1x256xf32>
    %4 = vector.multi_reduction <add>, %3, %cst [1] : vector<1x4x256xf32> to vector<1x256xf32>
    %5 = vector.shape_cast %4 : vector<1x256xf32> to vector<1x1x256xf32>
    %c0_5 = arith.constant 0 : index
    %6 = memref.load %arg3[%c0_5] : memref<1xf32, #tpu.memory_space<smem>>
    %7 = vector.broadcast %6 : f32 to vector<1x1x256xf32>
    %8 = arith.addf %5, %7 : vector<1x1x256xf32>
    %cst_6 = arith.constant 0.000000e+00 : f32
    %9 = vector.broadcast %cst_6 : f32 to vector<1x1x256xf32>
    %10 = arith.subf %9, %8 : vector<1x1x256xf32>
    %11 = math.exp %10 : vector<1x1x256xf32>
    %cst_7 = arith.constant 1.000000e+00 : f32
    %12 = vector.broadcast %cst_7 : f32 to vector<1x1x256xf32>
    %13 = arith.addf %12, %11 : vector<1x1x256xf32>
    %14 = tpu.reciprocal %13 : vector<1x1x256xf32> -> vector<1x1x256xf32>
    %c0_8 = arith.constant 0 : index
    %c0_9 = arith.constant 0 : index
    %c0_10 = arith.constant 0 : index
    %15 = vector.load %arg5[%c0_8, %c0_9, %c0_10] : memref<1x1x256xf32, #tpu.memory_space<vmem>>, vector<1x1x256xf32>
    tpu.vector_store %arg5[%c0_8, %c0_9, %c0_10], %14 {strides = array<i32>} : memref<1x1x256xf32, #tpu.memory_space<vmem>>, vector<1x1x256xf32>,
    return
  }
  func.func @transform_0(%arg0: i32, %arg1: i32) -> (i32, i32, i32) {
    %c0_i32 = arith.constant 0 : i32
    %c0_i32_0 = arith.constant 0 : i32
    %c0_i32_1 = arith.constant 0 : i32
    %c0_i32_2 = arith.constant 0 : i32
    return %c0_i32, %c0_i32_0, %c0_i32_1 : i32, i32, i32
  }
  func.func @transform_1(%arg0: i32, %arg1: i32) -> i32 {
    %c0_i32 = arith.constant 0 : i32
    %c0_i32_0 = arith.constant 0 : i32
    return %c0_i32 : i32
  }
  func.func @transform_2(%arg0: i32, %arg1: i32) -> (i32, i32, i32) {
    %c0_i32 = arith.constant 0 : i32
    %c0_i32_0 = arith.constant 0 : i32
    return %arg0, %c0_i32, %arg1 : i32, i32, i32
  }
  func.func @transform_3(%arg0: i32, %arg1: i32) -> (i32, i32, i32) {
    %c0_i32 = arith.constant 0 : i32
    %c0_i32_0 = arith.constant 0 : i32
    return %arg0, %c0_i32, %arg1 : i32, i32, i32
  }
}

</mosaic_0001>

<bundles_post_ra>
// kernel: prediction_forward.1
= control target key start
LH: loop header
LB: loop body
LE: loop exit
PB: predicated region body
PF: predicated region fallthrough
CT: control target
= control target key end

     0   :  { %s469_s14 = smov 0   ;;  %s471_s15 = smov 0   ;;  %s515_s0 = inlined_call_operand.vmem [shape: f32[1,4,1], index: 0, kind: input, shape index: {}]   ;;  %s516_s1 = inlined_call_operand.<no memory space> [shape: f32[1], index: 1, kind: input, shape index: {}]   ;;  %s517_s2 = inlined_call_operand.vmem [shape: f32[2,4,256], index: 2, kind: input, shape index: {}]   ;;  %s518_s3 = inlined_call_operand.vmem [shape: f32[2,1,256], index: 3, kind: output, shape index: {}]  }
   0x1   :  { %8 = sst [smem:[#allocation2]] %s516_s1  ;;  %s473_s16 = smov 0  }
   0x2 LB: > { %s26_s1 = sadd.s32 1, %s438_s15  ;;  %p378_p0 = scmp.ge.s32.totalorder %s442_s16, 1  ;;  %s442_s16 = sphi %s473_s16, %s14_s16   ;;  %s438_s15 = sphi %s471_s15, %s522_s15   ;;  %s434_s14 = sphi %s469_s14, %s521_s14  }
   0x3   : > { %p28_p1 = scmp.ge.s32.totalorder %s26_s1, 2  ;;  %p159_p2 = scmp.lt.s32.totalorder %s442_s16, 3 }
   0x5   : > { %s524_s1 = smov (%p28_p1, %s26_s1), 0  ;;  %p160_p3 = pnand %p378_p0, %p159_p2 }
   0x6   : > { %p191_p4 = scmp.lt.s32.totalorder (!%p160_p3), %s434_s14, 1  ;;  %s242_s23 = sld [smem:[#allocation2]] (!%p160_p3) }
   0x7   : > { %163 = sbr.rel (%p160_p3) target bundleno = 191 (0xbf), region = 32 }
   0xc   : > { %v210_v0 = vld [vmem:[%s515_s0] sm:$0xf]  ;;  %v444_v1 = vmov 0   ;;  %s526_s14 = smov (!%p191_p4, %s434_s14), 1  ;;  %v445_v2 = vmov 839922192   ;;  %v243_v23 = vstv %s242_s23  ;;  %v288_v48 = vlaneseq }
   0xd   : > { %411 = vset.pattern.permute.xlu0 %v444_v1  ;;  %v216_v3 = vunpack.c.l.s4 %v445_v2  ;;  %s384_s19 = sshll.u32 %s526_s14, 3  ;;  %vm227_vm0 = vcmask 1043456   ;;  %s381_s24 = sshll.u32 %s526_s14, 1  ;;  %vm285_vm8 = vcmask 1040384  }
   0xe   : > { %213 = vperm.xlu0 %411, %v210_v0   ;;  %s198_s22 = scalar_lea.vmem %s517_s2, %s384_s19  ;;  %vm290_vm9 = vcmp.lt.s32.totalorder %v288_v48, 256  ;;  %s207_s27 = scalar_lea.vmem %s518_s3, %s381_s24 }
   0xf   : > { %v217_v4 = vunpack.c.0.s8 %v216_v3  ;;  %v209_v6 = vld [vmem:[%s198_s22] sm:$0xff] }
  0x80   : > { %v214_v5 = vpop.permute.xlu0 %213 }
  0x81   : > { %v218_v7 = vperm.slane %v214_v5, %v217_v4 }
  0x83   : > { %v220_v8 = vmul.f32 %v218_v7, %v209_v6 }
  0x85   : > { %222 = vst [vmem:[#allocation1] ss:$2 sm:$0xff] %v220_v8 }
  0x8c   : > { %v223_v9 = vld.sshfl [vmem:[#allocation1] sm:$0xff pattern:$0x75316420]  ;;  %v224_v10 = vld.sshfl [vmem:[#allocation1 + $0x8] sm:$0xff pattern:$0x75316420] }
  0x8d   : > { %v228_v11 = vsel %vm227_vm0, %v223_v9, 0.0  ;;  %v235_v12 = vsel %vm227_vm0, %v224_v10, 0.0 }
  0x8e   : > { %v229_v13 = vrot.slane %v228_v11, 4  ;;  %v236_v14 = vrot.slane %v235_v12, 4 }
  0x90   : > { %v230_v15 = vadd.f32 %v229_v13, %v228_v11  ;;  %v237_v16 = vadd.f32 %v236_v14, %v235_v12 }
  0x92   : > { %v231_v17 = vrot.slane %v230_v15, 2  ;;  %v238_v18 = vrot.slane %v237_v16, 2 }
  0x94   : > { %v232_v19 = vadd.f32 %v231_v17, %v230_v15  ;;  %v239_v20 = vadd.f32 %v238_v18, %v237_v16 }
  0x96   : > { %v233_v21 = vrot.slane %v232_v19, 1  ;;  %v240_v22 = vrot.slane %v239_v20, 1 }
  0x98   : > { %v234_v24 = vadd.f32 %v233_v21, %v232_v19  ;;  %v241_v25 = vadd.f32 %v240_v22, %v239_v20 }
  0x9a   : > { %v244_v26 = vadd.f32 %v243_v23, %v234_v24  ;;  %v245_v27 = vadd.f32 %v243_v23, %v241_v25 }
  0x9c   : > { %v246_v28 = vsub.f32 0.0, %v244_v26  ;;  %v247_v29 = vsub.f32 0.0, %v245_v27 }
  0x9e   : > { %v248_v30 = vmul.f32 1.442695, %v246_v28  ;;  %v250_v31 = vmul.f32 1.442695, %v247_v29 }
  0xa0   : > { %412 = vpow2.f32 %v248_v30 }
  0xa1   : > { %414 = vpow2.f32 %v250_v31 }
  0xa6   : > { %v413_v32 = vpop.eup %412 }
  0xa7   : > { %v415_v33 = vpop.eup %414  ;;  %v252_v34 = vadd.f32 1.0, %v413_v32 }
  0xa8   : > { %v253_v35 = vadd.f32 1.0, %v415_v33 }
  0xa9   : > { %416 = vrcp.f32 %v252_v34  ;;  %vm259_vm3 = vweird.f32 %v252_v34  ;;  %v265_v47 = vand.u32 2147483648, %v252_v34  ;;  %v263_v50 = vand.u32 2147483647, %v252_v34 }
  0xaa   : > { %418 = vrcp.f32 %v253_v35  ;;  %v279_v43 = vand.u32 2147483648, %v253_v35  ;;  %v277_v45 = vand.u32 2147483647, %v253_v35  ;;  %vm273_vm5 = vweird.f32 %v253_v35 }
  0xab   : > { %v266_v55 = vor.u32 1.1754944e-38, %v265_v47  ;;  %vm264_vm10 = vcmp.eq.f32.partialorder %v263_v50, 8.507059e+37 }
  0xac   : > { %v280_v52 = vor.u32 1.1754944e-38, %v279_v43  ;;  %vm278_vm7 = vcmp.eq.f32.partialorder %v277_v45, 8.507059e+37 }
  0xaf   : > { %v417_v36 = vpop.eup %416 }
  0xb0   : > { %v419_v37 = vpop.eup %418  ;;  %v255_v38 = vmul.f32 %v417_v36, %v252_v34  ;;  %vm260_vm1 = vweird.f32 %v417_v36 }
  0xb1   : > { %v269_v39 = vmul.f32 %v419_v37, %v253_v35  ;;  %vm274_vm2 = vweird.f32 %v419_v37  ;;  %vm496_vm4 = vmor %vm259_vm3, %vm260_vm1 }
  0xb2   : > { %v256_v40 = vsub.f32 1.0, %v255_v38  ;;  %vm275_vm6 = vmor %vm273_vm5, %vm274_vm2 }
  0xb3   : > { %v270_v41 = vsub.f32 1.0, %v269_v39 }
  0xb4   : > { %v257_v42 = vmul.f32 %v417_v36, %v256_v40 }
  0xb5   : > { %v271_v44 = vmul.f32 %v419_v37, %v270_v41 }
  0xb6   : > { %v258_v46 = vadd.f32 %v417_v36, %v257_v42 }
  0xb7   : > { %v272_v51 = vadd.f32 %v419_v37, %v271_v44 }
  0xb8   : > { %v262_v53 = vsel %vm496_vm4, %v417_v36, %v258_v46 }
  0xb9   : > { %v276_v54 = vsel %vm275_vm6, %v419_v37, %v272_v51  ;;  %v267_v58 = vsel %vm264_vm10, %v266_v55, %v262_v53 }
  0xba   : > { %v281_v56 = vsel %vm278_vm7, %v280_v52, %v276_v54 }
  0xbb   : > { %v284_v57 = vrot.slane %v281_v56, 7 }
  0xbd   : > { %v286_v59 = vsel %vm285_vm8, %v267_v58, %v284_v57 }
  0xbe   : > { %292 = vst.msk [vmem:[%s207_s27] sm:$0x3] %vm290_vm9, %v286_v59 }
  0xbf PF: > { %s14_s16 = sadd.s32 1, %s442_s16   ;;  %s521_s14 = smov %s438_s15 }
  0xc0   : > { %p11_p5 = scmp.ge.s32.totalorder %s14_s16, 4   ;;  %s522_s15 = smov %s524_s1 }
  0xc2   :  { %13 = sbr.rel (!%p11_p5) target bundleno = 2 (0x2), region = 62 }

</bundles_post_ra>
